<compile_context>
chip_gen: v6e
topology: v6e:2x2x1
jax: 0.10.0
libtpu: 0.0.40
codegen_flags: <defaults>
</compile_context>

<pallas_src>
import jax
import jax.numpy as jnp
from jax.experimental import pallas as pl
from jax.experimental.pallas import tpu as pltpu


def _make_kernel(C):
    """Kernel for one (batch b, spatial tile s) block.

    Args (in pallas_call order):
      w_ref   : SMEM (C, C)   channel-mix weight (scalar reads).
      b_ref   : SMEM (1, C)   bias.
      x_ref   : VMEM (1, C, tn) activation tile, lane axis = spatial.
      y_ref   : VMEM (1, C, tn) output tile.
      loss_ref: VMEM (1, 1)   scalar loss accumulator output (written once).
      acc_ref : VMEM (C, tn)  scratch, elementwise running sum of y*y.
    """

    def kernel(w_ref, b_ref, x_ref, y_ref, loss_ref, acc_ref):
        bi = pl.program_id(0)
        si = pl.program_id(1)
        ns = pl.num_programs(1)
        step = bi * ns + si
        last = pl.num_programs(0) * ns - 1

        @pl.when(step == 0)
        def _():
            acc_ref[...] = jnp.zeros_like(acc_ref)

        x = x_ref[0]                                   # (C, tn) f32, lane-dense

        # y[d, :] = sum_c W[c, d] * x[c, :] + b[d]
        # C is tiny and static -> fully unrolled VPU scalar*vector FMAs;
        # no MXU push/pop for a 4x4 contraction.
        rows = []
        for d in range(C):
            r = x[0:1, :] * w_ref[0, d]
            for c in range(1, C):
                r = r + x[c:c+1, :] * w_ref[c, d]
            rows.append(r + b_ref[0, d])               # bias fused per row
        y = jnp.concatenate(rows, axis=0)              # (C, tn)

        y_ref[0] = y.astype(y_ref.dtype)               # single lane-dense store

        # Elementwise partial accumulation only (pure VPU); the expensive
        # cross-lane reduce happens once, in the epilogue below.
        acc_ref[...] = acc_ref[...] + y * y

        @pl.when(step == last)
        def _():
            loss_ref[...] = jnp.full((1, 1), jnp.sum(acc_ref[...]), jnp.float32)

    return kernel


def _pick_spatial_tile(hw, max_tile=2048):
    """Largest multiple of 128 that divides hw (capped at max_tile), else hw."""
    if hw % 128 != 0:
        return hw            # full-extent block is always legal
    t = min(max_tile, hw)
    t -= t % 128
    while t >= 128:
        if hw % t == 0:
            return t
        t -= 128
    return hw


def permute_to_from(x, W, b):
    """Forward of PermuteToFrom with fn = (channel linear, aux MSE-like loss).

    Args:
      x: [B, C, H, W] float32 (NCHW).
      W: [C, C] channel-mixing weight.
      b: [1, C] bias.
    Returns:
      (out [B, C, H, W], loss scalar) — matching the PyTorch return (out, loss).
    """
    B, C, H, Wd = x.shape
    hw = H * Wd

    # The permute(0,2,3,1)/permute(0,3,1,2) pair is folded away: we keep NCHW
    # and contract over C inside the kernel.  This reshape is a free view.
    x3 = x.reshape(B, C, hw)

    tn = _pick_spatial_tile(hw)
    n_s = hw // tn

    block_bytes = C * tn * 4
    # 2 double-buffered pipeline buffers for x and y + scratch + slack,
    # clamped to a budget safe on every generation (v5e 16 MiB default scoped,
    # v7x 64 MiB physical).
    vmem_limit = int(min(max(6 * block_bytes + (1 << 21), 16 << 20), 32 << 20))

    kernel = _make_kernel(C)

    y3, loss_sum = pl.pallas_call(
        kernel,
        out_shape=(
            jax.ShapeDtypeStruct((B, C, hw), x.dtype),
            jax.ShapeDtypeStruct((1, 1), jnp.float32),
        ),
        grid=(B, n_s),
        in_specs=[
            pl.BlockSpec(memory_space=pltpu.MemorySpace.SMEM),          # W
            pl.BlockSpec(memory_space=pltpu.MemorySpace.SMEM),          # b
            pl.BlockSpec((1, C, tn), lambda bi, si: (bi, 0, si)),       # x tile
        ],
        out_specs=(
            pl.BlockSpec((1, C, tn), lambda bi, si: (bi, 0, si)),       # y tile
            pl.BlockSpec((1, 1), lambda bi, si: (0, 0)),                # loss
        ),
        scratch_shapes=[pltpu.VMEM((C, tn), jnp.float32)],
        compiler_params=pltpu.CompilerParams(
            # TODO(synk): the loss lives in a resident scratch accumulator, so
            # both axes must stay "arbitrary"; to use both v7x TensorCores,
            # emit per-tile partial losses instead and mark batch "parallel".
            dimension_semantics=("arbitrary", "arbitrary"),
            vmem_limit_bytes=vmem_limit,
        ),
    )(W, b, x3)

    loss = loss_sum[0, 0] / jnp.float32(B * C * hw)    # mean(y**2)
    out = y3.reshape(B, C, H, Wd)                      # still NCHW, free view
    return out, loss


def _reference(x, W, b):
    """Pure-JAX reference (explicit permute path, like the PyTorch module)."""
    x_nhwc = jnp.transpose(x, (0, 2, 3, 1))
    y = jnp.einsum("bhwc,cd->bhwd", x_nhwc, W) + b[0]
    loss = jnp.mean(y * y)
    return jnp.transpose(y, (0, 3, 1, 2)), loss


if __name__ == "__main__":
    # TODO(synk): PermuteToFrom's wrapped `fn` is arbitrary in the original
    # code; it is instantiated here as a deterministic channel linear + loss.
    key = jax.random.PRNGKey(0)
    kx, kw, kb = jax.random.split(key, 3)

    B, C, H, Wd = 2, 4, 16, 16
    x = jax.random.normal(kx, (B, C, H, Wd), dtype=jnp.float32)
    W = jax.random.normal(kw, (C, C), dtype=jnp.float32) / jnp.sqrt(C)
    b = jax.random.normal(kb, (1, C), dtype=jnp.float32) * 0.01

    out, loss = jax.jit(permute_to_from)(x, W, b)
    out = jax.block_until_ready(out)
    loss = jax.block_until_ready(loss)

    ref_out, ref_loss = _reference(x, W, b)
    assert out.shape == (B, C, H, Wd)
    assert jnp.allclose(out, ref_out, atol=1e-4, rtol=1e-4)
    assert jnp.allclose(loss, ref_loss, atol=1e-5, rtol=1e-5)

    print("KERNEL_OK")
</pallas_src>

<mosaic_0001>
module attributes {stable_mosaic.version = 11 : i64} {
  func.func @kernel(%arg0: i32, %arg1: i32, %arg2: memref<4x4xf32, #tpu.memory_space<smem>>, %arg3: memref<1x4xf32, #tpu.memory_space<smem>>, %arg4: memref<1x4x256xf32, #tpu.memory_space<vmem>>, %arg5: memref<1x4x256xf32, #tpu.memory_space<vmem>>, %arg6: memref<1x1xf32, #tpu.memory_space<vmem>>, %arg7: memref<4x256xf32, #tpu.memory_space<vmem>>) attributes {dimension_semantics = [#tpu.dimension_semantics<arbitrary>, #tpu.dimension_semantics<arbitrary>], iteration_bounds = array<i64: 2, 1>, scalar_prefetch = 0 : i64, scratch_operands = 1 : i64, tpu.core_type = #tpu.core_type<tc>, window_params = [{transform_indices = @transform_0, window_bounds = array<i64: 4, 4>}, {transform_indices = @transform_1, window_bounds = array<i64: 1, 4>}, {transform_indices = @transform_2, window_bounds = array<i64: 1, 4, 256>}, {transform_indices = @transform_3, window_bounds = array<i64: 1, 4, 256>}, {pipeline_mode = #tpu.pipeline_mode<synchronous>, transform_indices = @transform_4, window_bounds = array<i64: 1, 1>}]} {
    %c1_i32 = arith.constant 1 : i32
    %0 = arith.muli %arg0, %c1_i32 : i32
    %1 = arith.addi %0, %arg1 : i32
    %c0_i32 = arith.constant 0 : i32
    %2 = arith.cmpi eq, %1, %c0_i32 : i32
    %3 = arith.extui %2 : i1 to i32
    %c0_i32_0 = arith.constant 0 : i32
    %4 = arith.cmpi ne, %3, %c0_i32_0 : i32
    scf.if %4 {
      %cst = arith.constant 0.000000e+00 : f32
      %106 = vector.broadcast %cst : f32 to vector<4x256xf32>
      %c0_49 = arith.constant 0 : index
      %c0_50 = arith.constant 0 : index
      %107 = vector.load %arg7[%c0_49, %c0_50] : memref<4x256xf32, #tpu.memory_space<vmem>>, vector<4x256xf32>
      tpu.vector_store %arg7[%c0_49, %c0_50], %106 {strides = array<i32>} : memref<4x256xf32, #tpu.memory_space<vmem>>, vector<4x256xf32>,
    } else {
    }
    %c0 = arith.constant 0 : index
    %c0_1 = arith.constant 0 : index
    %c0_2 = arith.constant 0 : index
    %5 = vector.load %arg4[%c0, %c0_1, %c0_2] : memref<1x4x256xf32, #tpu.memory_space<vmem>>, vector<1x4x256xf32>
    %6 = vector.shape_cast %5 : vector<1x4x256xf32> to vector<4x256xf32>
    %7 = vector.extract_strided_slice %6 {offsets = [0, 0], sizes = [1, 256], strides = [1, 1]} : vector<4x256xf32> to vector<1x256xf32>
    %c0_3 = arith.constant 0 : index
    %c0_4 = arith.constant 0 : index
    %8 = memref.load %arg2[%c0_3, %c0_4] : memref<4x4xf32, #tpu.memory_space<smem>>
    %9 = vector.broadcast %8 : f32 to vector<1x256xf32>
    %10 = arith.mulf %7, %9 : vector<1x256xf32>
    %11 = vector.extract_strided_slice %6 {offsets = [1, 0], sizes = [1, 256], strides = [1, 1]} : vector<4x256xf32> to vector<1x256xf32>
    %c1 = arith.constant 1 : index
    %c0_5 = arith.constant 0 : index
    %12 = memref.load %arg2[%c1, %c0_5] : memref<4x4xf32, #tpu.memory_space<smem>>
    %13 = vector.broadcast %12 : f32 to vector<1x256xf32>
    %14 = arith.mulf %11, %13 : vector<1x256xf32>
    %15 = arith.addf %10, %14 : vector<1x256xf32>
    %16 = vector.extract_strided_slice %6 {offsets = [2, 0], sizes = [1, 256], strides = [1, 1]} : vector<4x256xf32> to vector<1x256xf32>
    %c2 = arith.constant 2 : index
    %c0_6 = arith.constant 0 : index
    %17 = memref.load %arg2[%c2, %c0_6] : memref<4x4xf32, #tpu.memory_space<smem>>
    %18 = vector.broadcast %17 : f32 to vector<1x256xf32>
    %19 = arith.mulf %16, %18 : vector<1x256xf32>
    %20 = arith.addf %15, %19 : vector<1x256xf32>
    %21 = vector.extract_strided_slice %6 {offsets = [3, 0], sizes = [1, 256], strides = [1, 1]} : vector<4x256xf32> to vector<1x256xf32>
    %c3 = arith.constant 3 : index
    %c0_7 = arith.constant 0 : index
    %22 = memref.load %arg2[%c3, %c0_7] : memref<4x4xf32, #tpu.memory_space<smem>>
    %23 = vector.broadcast %22 : f32 to vector<1x256xf32>
    %24 = arith.mulf %21, %23 : vector<1x256xf32>
    %25 = arith.addf %20, %24 : vector<1x256xf32>
    %c0_8 = arith.constant 0 : index
    %c0_9 = arith.constant 0 : index
    %26 = memref.load %arg3[%c0_8, %c0_9] : memref<1x4xf32, #tpu.memory_space<smem>>
    %27 = vector.broadcast %26 : f32 to vector<1x256xf32>
    %28 = arith.addf %25, %27 : vector<1x256xf32>
    %29 = vector.extract_strided_slice %6 {offsets = [0, 0], sizes = [1, 256], strides = [1, 1]} : vector<4x256xf32> to vector<1x256xf32>
    %c0_10 = arith.constant 0 : index
    %c1_11 = arith.constant 1 : index
    %30 = memref.load %arg2[%c0_10, %c1_11] : memref<4x4xf32, #tpu.memory_space<smem>>
    %31 = vector.broadcast %30 : f32 to vector<1x256xf32>
    %32 = arith.mulf %29, %31 : vector<1x256xf32>
    %33 = vector.extract_strided_slice %6 {offsets = [1, 0], sizes = [1, 256], strides = [1, 1]} : vector<4x256xf32> to vector<1x256xf32>
    %c1_12 = arith.constant 1 : index
    %c1_13 = arith.constant 1 : index
    %34 = memref.load %arg2[%c1_12, %c1_13] : memref<4x4xf32, #tpu.memory_space<smem>>
    %35 = vector.broadcast %34 : f32 to vector<1x256xf32>
    %36 = arith.mulf %33, %35 : vector<1x256xf32>
    %37 = arith.addf %32, %36 : vector<1x256xf32>
    %38 = vector.extract_strided_slice %6 {offsets = [2, 0], sizes = [1, 256], strides = [1, 1]} : vector<4x256xf32> to vector<1x256xf32>
    %c2_14 = arith.constant 2 : index
    %c1_15 = arith.constant 1 : index
    %39 = memref.load %arg2[%c2_14, %c1_15] : memref<4x4xf32, #tpu.memory_space<smem>>
    %40 = vector.broadcast %39 : f32 to vector<1x256xf32>
    %41 = arith.mulf %38, %40 : vector<1x256xf32>
    %42 = arith.addf %37, %41 : vector<1x256xf32>
    %43 = vector.extract_strided_slice %6 {offsets = [3, 0], sizes = [1, 256], strides = [1, 1]} : vector<4x256xf32> to vector<1x256xf32>
    %c3_16 = arith.constant 3 : index
    %c1_17 = arith.constant 1 : index
    %44 = memref.load %arg2[%c3_16, %c1_17] : memref<4x4xf32, #tpu.memory_space<smem>>
    %45 = vector.broadcast %44 : f32 to vector<1x256xf32>
    %46 = arith.mulf %43, %45 : vector<1x256xf32>
    %47 = arith.addf %42, %46 : vector<1x256xf32>
    %c0_18 = arith.constant 0 : index
    %c1_19 = arith.constant 1 : index
    %48 = memref.load %arg3[%c0_18, %c1_19] : memref<1x4xf32, #tpu.memory_space<smem>>
    %49 = vector.broadcast %48 : f32 to vector<1x256xf32>
    %50 = arith.addf %47, %49 : vector<1x256xf32>
    %51 = vector.extract_strided_slice %6 {offsets = [0, 0], sizes = [1, 256], strides = [1, 1]} : vector<4x256xf32> to vector<1x256xf32>
    %c0_20 = arith.constant 0 : index
    %c2_21 = arith.constant 2 : index
    %52 = memref.load %arg2[%c0_20, %c2_21] : memref<4x4xf32, #tpu.memory_space<smem>>
    %53 = vector.broadcast %52 : f32 to vector<1x256xf32>
    %54 = arith.mulf %51, %53 : vector<1x256xf32>
    %55 = vector.extract_strided_slice %6 {offsets = [1, 0], sizes = [1, 256], strides = [1, 1]} : vector<4x256xf32> to vector<1x256xf32>
    %c1_22 = arith.constant 1 : index
    %c2_23 = arith.constant 2 : index
    %56 = memref.load %arg2[%c1_22, %c2_23] : memref<4x4xf32, #tpu.memory_space<smem>>
    %57 = vector.broadcast %56 : f32 to vector<1x256xf32>
    %58 = arith.mulf %55, %57 : vector<1x256xf32>
    %59 = arith.addf %54, %58 : vector<1x256xf32>
    %60 = vector.extract_strided_slice %6 {offsets = [2, 0], sizes = [1, 256], strides = [1, 1]} : vector<4x256xf32> to vector<1x256xf32>
    %c2_24 = arith.constant 2 : index
    %c2_25 = arith.constant 2 : index
    %61 = memref.load %arg2[%c2_24, %c2_25] : memref<4x4xf32, #tpu.memory_space<smem>>
    %62 = vector.broadcast %61 : f32 to vector<1x256xf32>
    %63 = arith.mulf %60, %62 : vector<1x256xf32>
    %64 = arith.addf %59, %63 : vector<1x256xf32>
    %65 = vector.extract_strided_slice %6 {offsets = [3, 0], sizes = [1, 256], strides = [1, 1]} : vector<4x256xf32> to vector<1x256xf32>
    %c3_26 = arith.constant 3 : index
    %c2_27 = arith.constant 2 : index
    %66 = memref.load %arg2[%c3_26, %c2_27] : memref<4x4xf32, #tpu.memory_space<smem>>
    %67 = vector.broadcast %66 : f32 to vector<1x256xf32>
    %68 = arith.mulf %65, %67 : vector<1x256xf32>
    %69 = arith.addf %64, %68 : vector<1x256xf32>
    %c0_28 = arith.constant 0 : index
    %c2_29 = arith.constant 2 : index
    %70 = memref.load %arg3[%c0_28, %c2_29] : memref<1x4xf32, #tpu.memory_space<smem>>
    %71 = vector.broadcast %70 : f32 to vector<1x256xf32>
    %72 = arith.addf %69, %71 : vector<1x256xf32>
    %73 = vector.extract_strided_slice %6 {offsets = [0, 0], sizes = [1, 256], strides = [1, 1]} : vector<4x256xf32> to vector<1x256xf32>
    %c0_30 = arith.constant 0 : index
    %c3_31 = arith.constant 3 : index
    %74 = memref.load %arg2[%c0_30, %c3_31] : memref<4x4xf32, #tpu.memory_space<smem>>
    %75 = vector.broadcast %74 : f32 to vector<1x256xf32>
    %76 = arith.mulf %73, %75 : vector<1x256xf32>
    %77 = vector.extract_strided_slice %6 {offsets = [1, 0], sizes = [1, 256], strides = [1, 1]} : vector<4x256xf32> to vector<1x256xf32>
    %c1_32 = arith.constant 1 : index
    %c3_33 = arith.constant 3 : index
    %78 = memref.load %arg2[%c1_32, %c3_33] : memref<4x4xf32, #tpu.memory_space<smem>>
    %79 = vector.broadcast %78 : f32 to vector<1x256xf32>
    %80 = arith.mulf %77, %79 : vector<1x256xf32>
    %81 = arith.addf %76, %80 : vector<1x256xf32>
    %82 = vector.extract_strided_slice %6 {offsets = [2, 0], sizes = [1, 256], strides = [1, 1]} : vector<4x256xf32> to vector<1x256xf32>
    %c2_34 = arith.constant 2 : index
    %c3_35 = arith.constant 3 : index
    %83 = memref.load %arg2[%c2_34, %c3_35] : memref<4x4xf32, #tpu.memory_space<smem>>
    %84 = vector.broadcast %83 : f32 to vector<1x256xf32>
    %85 = arith.mulf %82, %84 : vector<1x256xf32>
    %86 = arith.addf %81, %85 : vector<1x256xf32>
    %87 = vector.extract_strided_slice %6 {offsets = [3, 0], sizes = [1, 256], strides = [1, 1]} : vector<4x256xf32> to vector<1x256xf32>
    %c3_36 = arith.constant 3 : index
    %c3_37 = arith.constant 3 : index
    %88 = memref.load %arg2[%c3_36, %c3_37] : memref<4x4xf32, #tpu.memory_space<smem>>
    %89 = vector.broadcast %88 : f32 to vector<1x256xf32>
    %90 = arith.mulf %87, %89 : vector<1x256xf32>
    %91 = arith.addf %86, %90 : vector<1x256xf32>
    %c0_38 = arith.constant 0 : index
    %c3_39 = arith.constant 3 : index
    %92 = memref.load %arg3[%c0_38, %c3_39] : memref<1x4xf32, #tpu.memory_space<smem>>
    %93 = vector.broadcast %92 : f32 to vector<1x256xf32>
    %94 = arith.addf %91, %93 : vector<1x256xf32>
    %95 = tpu.concatenate %28, %50, %72, %94 in 0 : vector<1x256xf32>, vector<1x256xf32>, vector<1x256xf32>, vector<1x256xf32> -> vector<4x256xf32>
    %c0_40 = arith.constant 0 : index
    %c0_41 = arith.constant 0 : index
    %c0_42 = arith.constant 0 : index
    %96 = vector.load %arg5[%c0_40, %c0_41, %c0_42] : memref<1x4x256xf32, #tpu.memory_space<vmem>>, vector<1x4x256xf32>
    %97 = vector.shape_cast %96 : vector<1x4x256xf32> to vector<4x256xf32>
    %98 = vector.shape_cast %95 : vector<4x256xf32> to vector<1x4x256xf32>
    tpu.vector_store %arg5[%c0_40, %c0_41, %c0_42], %98 {strides = array<i32>} : memref<1x4x256xf32, #tpu.memory_space<vmem>>, vector<1x4x256xf32>,
    %c0_43 = arith.constant 0 : index
    %c0_44 = arith.constant 0 : index
    %99 = vector.load %arg7[%c0_43, %c0_44] : memref<4x256xf32, #tpu.memory_space<vmem>>, vector<4x256xf32>
    %100 = arith.mulf %95, %95 : vector<4x256xf32>
    %101 = arith.addf %99, %100 : vector<4x256xf32>
    %c0_45 = arith.constant 0 : index
    %c0_46 = arith.constant 0 : index
    %102 = vector.load %arg7[%c0_45, %c0_46] : memref<4x256xf32, #tpu.memory_space<vmem>>, vector<4x256xf32>
    tpu.vector_store %arg7[%c0_45, %c0_46], %101 {strides = array<i32>} : memref<4x256xf32, #tpu.memory_space<vmem>>, vector<4x256xf32>,
    %c1_i32_47 = arith.constant 1 : i32
    %103 = arith.cmpi eq, %1, %c1_i32_47 : i32
    %104 = arith.extui %103 : i1 to i32
    %c0_i32_48 = arith.constant 0 : i32
    %105 = arith.cmpi ne, %104, %c0_i32_48 : i32
    scf.if %105 {
      %c0_49 = arith.constant 0 : index
      %c0_50 = arith.constant 0 : index
      %106 = vector.load %arg7[%c0_49, %c0_50] : memref<4x256xf32, #tpu.memory_space<vmem>>, vector<4x256xf32>
      %107 = vector.shape_cast %106 : vector<4x256xf32> to vector<1x4x256xf32>
      %cst = arith.constant dense<0.000000e+00> : vector<1xf32>
      %108 = vector.multi_reduction <add>, %107, %cst [1, 2] : vector<1x4x256xf32> to vector<1xf32>
      %109 = vector.shape_cast %108 : vector<1xf32> to vector<1x1x1xf32>
      %110 = vector.extract %109[0, 0, 0] : f32 from vector<1x1x1xf32>
      %111 = vector.broadcast %110 : f32 to vector<1x1xf32>
      %c0_51 = arith.constant 0 : index
      %c0_52 = arith.constant 0 : index
      %112 = vector.load %arg6[%c0_51, %c0_52] : memref<1x1xf32, #tpu.memory_space<vmem>>, vector<1x1xf32>
      tpu.vector_store %arg6[%c0_51, %c0_52], %111 {strides = array<i32>} : memref<1x1xf32, #tpu.memory_space<vmem>>, vector<1x1xf32>,
    } else {
    }
    return
  }
  func.func @transform_0(%arg0: i32, %arg1: i32) -> (i32, i32) {
    %c0_i32 = arith.constant 0 : i32
    %c0_i32_0 = arith.constant 0 : i32
    %c0_i32_1 = arith.constant 0 : i32
    return %c0_i32, %c0_i32_0 : i32, i32
  }
  func.func @transform_1(%arg0: i32, %arg1: i32) -> (i32, i32) {
    %c0_i32 = arith.constant 0 : i32
    %c0_i32_0 = arith.constant 0 : i32
    %c0_i32_1 = arith.constant 0 : i32
    return %c0_i32, %c0_i32_0 : i32, i32
  }
  func.func @transform_2(%arg0: i32, %arg1: i32) -> (i32, i32, i32) {
    %c0_i32 = arith.constant 0 : i32
    %c0_i32_0 = arith.constant 0 : i32
    return %arg0, %c0_i32, %arg1 : i32, i32, i32
  }
  func.func @transform_3(%arg0: i32, %arg1: i32) -> (i32, i32, i32) {
    %c0_i32 = arith.constant 0 : i32
    %c0_i32_0 = arith.constant 0 : i32
    return %arg0, %c0_i32, %arg1 : i32, i32, i32
  }
  func.func @transform_4(%arg0: i32, %arg1: i32) -> (i32, i32) {
    %c0_i32 = arith.constant 0 : i32
    %c0_i32_0 = arith.constant 0 : i32
    %c0_i32_1 = arith.constant 0 : i32
    return %c0_i32, %c0_i32_0 : i32, i32
  }
}

</mosaic_0001>

<bundles_post_ra>
// kernel: permute_to_from.1
= control target key start
LH: loop header
LB: loop body
LE: loop exit
PB: predicated region body
PF: predicated region fallthrough
CT: control target
= control target key end

     0   :  { %10 = vsyncpa [#allocation5], 0  ;;  %s970_s0 = inlined_call_operand.vmem [shape: f32[4,4], index: 0, kind: input, shape index: {}]   ;;  %s971_s1 = inlined_call_operand.vmem [shape: f32[1,4], index: 1, kind: input, shape index: {}]   ;;  %s972_s2 = inlined_call_operand.vmem [shape: f32[2,4,256], index: 2, kind: input, shape index: {}]   ;;  %s973_s3 = inlined_call_operand.vmem [shape: f32[2,4,256], index: 3, kind: output, shape index: {0}]   ;;  %s974_s4 = inlined_call_operand.hbm [shape: f32[1,1], index: 4, kind: output, shape index: {1}]  }
   0x1   :  { %11 = vsyncpa [#allocation7], 0 }
   0x2   :  { %12 = vsyncpa [#allocation4], 0  ;;  %s840_s15 = smov 0   ;;  %s842_s16 = smov 0  }
   0x3   :  { %s844_s17 = smov 0  }
   0x4 LB: > { %s614_s18 = sadd.s32 4294967295, %s809_s17   ;;  %s30_s19 = sadd.s32 1, %s805_s16  ;;  %s809_s17 = sphi %s844_s17, %s18_s17   ;;  %s805_s16 = sphi %s842_s16, %s985_s16   ;;  %s801_s15 = sphi %s840_s15, %s984_s15  }
   0x5   : > { %p32_p0 = scmp.ge.s32.totalorder %s30_s19, 2  ;;  %p616_p1 = scmp.ge.s32.totalorder %s809_s17, 1 }
   0x6   : > { %p154_p2 = scmp.lt.s32.totalorder %s809_s17, 3  ;;  %p867_p4 = scmp.eq.s32.totalorder %s614_s18, 0 }
   0x7   : > { %s987_s19 = smov (%p32_p0, %s30_s19), 0  ;;  %s167_s24 = sshll.u32 %s970_s0, 4  ;;  %s168_s24 = int_to_ptr.vmem [resolvable:$true] %s167_s24 }
   0x8   : > { %p861_p3 = pnand %p616_p1, %p154_p2  ;;  %s178_s27 = sshll.u32 %s971_s1, 4  ;;  %s179_s27 = int_to_ptr.vmem [resolvable:$true] %s178_s27 }
   0x9   : > { %s979_s21 = scalar_select %p867_p4, 1, 0 }
   0xa   : > { %s978_s20 = scalar_select %p861_p3, 1, 0 }
   0xb   : > { %p679_p5 = pneg %p861_p3  ;;  %s721_s29 = scalar_lea.vmem %s168_s24, 64 }
   0xc   : > { %p722_p7 = scmp.ne.s32.totalorder %s168_s24, %s721_s29  ;;  %p729_p11 = scmp.lt.s32.totalorder %s168_s24, %s168_s24 }
   0xd   : > { %p881_p6 = pnand %p867_p4, %p679_p5  ;;  %p730_p12 = scmp.lt.s32.totalorder %s721_s29, %s721_s29 }
   0xf   : > { %p723_p8 = pneg %p881_p6  ;;  %p731_p13 = por %p730_p12, %p729_p11 }
  0x11   : > { %p724_p9 = pnand %p723_p8, %p722_p7 }
  0x13   : > { %p725_p10 = pneg %p724_p9 }
  0x15   : > { %p732_p0 = pnand %p731_p13, %p725_p10 }
  0x17   : > { %735 = shalt.err (!%p732_p0)
}
  0x18   : > { %s811_s30 = smov [#allocation3]   ;;  %s736_s5 = scalar_lea.vmem %s179_s27, 16 }
  0x19   : > { %682 = dma.vmem_to_smem (!%p881_p6), %s168_s24, 64, %s811_s30, [#allocation5]  }
  0x1a   : > { %p737_p1 = scmp.ne.s32.totalorder %s179_s27, %s736_s5  ;;  %p744_p4 = scmp.lt.s32.totalorder %s179_s27, %s179_s27 }
  0x1b   : > { %p745_p3 = scmp.lt.s32.totalorder %s736_s5, %s736_s5 }
  0x1c   : > { %p739_p2 = pnand %p737_p1, %p723_p8 }
  0x1d   : > { %p746_p7 = por %p745_p3, %p744_p4 }
  0x1e   : > { %p740_p5 = pneg %p739_p2 }
  0x20   : > { %p747_p9 = pnand %p746_p7, %p740_p5 }
  0x22   : > { %750 = shalt.err (!%p747_p9)
}
  0x23   : > { %s812_s6 = smov [#allocation6]   ;;  %p981_p10 = scmp.ne.s32.totalorder %s978_s20, 0 }
  0x24   : > { %685 = dma.vmem_to_smem (!%p881_p6), %s179_s27, 16, %s812_s6, [#allocation7]  }
  0x25   : > { %204 = sbr.rel (%p981_p10) target bundleno = 331 (0x14b), region = 32  ;;  %p982_p11 = scmp.ne.s32.totalorder (!%p981_p10), %s979_s21, 0 }
  0x2a   : > { %788 = dma.done.wait (%p982_p11), [#allocation5], 64  }
  0x2b   : > { %790 = vsyncadd (%p982_p11), [#allocation5], 4294967232 }
  0x2c   : > { %792 = dma.done.wait (%p982_p11), [#allocation7], 16  }
  0x2d   : > { %794 = vsyncadd (%p982_p11), [#allocation7], 4294967280 }
  0x2e   : > { %214 = sfence }
  0x2f   : > { %p244_p3 = scmp.lt.s32.totalorder %s801_s15, 1  ;;  %p627_p4 = scmp.ne.s32.totalorder %s801_s15, 0 }
  0x31   : > { %s245_s7 = scalar_select %p244_p3, %s801_s15, 1 }
  0x32   : > { %267 = sbr.rel (%p627_p4) target bundleno = 57 (0x39), region = 44 }
  0x33   : > { %s663_s8 = sshll.u32 %s245_s7, 3 }
  0x34   : > { %s251_s11 = scalar_lea.vmem %s972_s2, %s663_s8  ;;  %s909_s14 = scalar_lea.vmem %s973_s3, %s663_s8 }
  0x37   : > { %v813_v0 = vmov 0.0  }
  0x38   : > { %268 = vst [vmem:[#allocation2] sm:$0xff] %v813_v0 }
  0x39 PF: > { %s270_s20 = sld [smem:[#allocation3]]  ;;  %v914_v1 = vld [vmem:[%s251_s11] sm:$0xff]  ;;  %v391_v15 = vlaneseq  ;;  %vm434_vm0 = vcmask 1040384   ;;  %vm437_vm1 = vcmask 1041408   ;;  %vm440_vm2 = vcmask 1042432   ;;  %p658_p6 = scmp.ne.s32.totalorder %s801_s15, 1 }
  0x3a   : > { %s628_s21 = sld [smem:[#allocation3 + $0x80]] }
  0x3b   : > { %s630_s22 = sld [smem:[#allocation3 + $0x100]]  ;;  %v392_v27 = vshrl.u32 %v391_v15, 7 }
  0x3c   : > { %s632_s23 = sld [smem:[#allocation3 + $0x180]] }
  0x3d   : > { %s912_s24 = sld [smem:[#allocation6]]  ;;  %v393_v42 = vsub.s32 0, %v392_v27  ;;  %v397_v46 = vsub.s32 4, %v392_v27 }
  0x3e   : > { %s634_s25 = sld [smem:[#allocation3 + $0x1]] }
  0x3f   : > { %v271_v2 = vstv %s270_s20  ;;  %s635_s26 = sld [smem:[#allocation3 + $0x81]] }
  0x40   : > { %v274_v3 = vstv %s628_s21  ;;  %s637_s27 = sld [smem:[#allocation3 + $0x101]]  ;;  %v272_v4 = vmul.f32 %v271_v2, %v914_v1 }
  0x41   : > { %v275_v5 = vmul.f32 %v274_v3, %v914_v1  ;;  %v282_v6 = vstv %s630_s22  ;;  %s639_s28 = sld [smem:[#allocation3 + $0x181]] }
  0x42   : > { %v283_v7 = vmul.f32 %v282_v6, %v914_v1  ;;  %v290_v8 = vstv %s632_s23  ;;  %s919_s29 = sld [smem:[#allocation6 + $0x1]] }
  0x43   : > { %v629_v9 = vrot.slane %v275_v5, 9  ;;  %v291_v10 = vmul.f32 %v290_v8, %v914_v1  ;;  %s642_s30 = sld [smem:[#allocation3 + $0x2]]  ;;  %v298_v35 = vstv %s912_s24 }
  0x44   : > { %v631_v11 = vrot.slane %v283_v7, 10  ;;  %v301_v12 = vstv %s634_s25  ;;  %s643_s5 = sld [smem:[#allocation3 + $0x82]] }
  0x45   : > { %v280_v13 = vadd.f32 %v629_v9, %v272_v4  ;;  %v304_v14 = vstv %s635_s26  ;;  %s645_s6 = sld [smem:[#allocation3 + $0x102]]  ;;  %v302_v16 = vmul.f32 %v301_v12, %v914_v1  ;;  %v633_v20 = vrot.slane %v291_v10, 11 }
  0x46   : > { %v305_v17 = vmul.f32 %v304_v14, %v914_v1  ;;  %v312_v18 = vstv %s637_s27  ;;  %s647_s7 = sld [smem:[#allocation3 + $0x182]] }
  0x47   : > { %v288_v19 = vadd.f32 %v631_v11, %v280_v13  ;;  %v313_v21 = vmul.f32 %v312_v18, %v914_v1  ;;  %v320_v22 = vstv %s639_s28  ;;  %s925_s8 = sld [smem:[#allocation6 + $0x2]] }
  0x48   : > { %v636_v23 = vrot.slane %v305_v17, 9  ;;  %v321_v24 = vmul.f32 %v320_v22, %v914_v1  ;;  %s928_s9 = sld [smem:[#allocation3 + $0x3]]  ;;  %v328_v39 = vstv %s919_s29 }
  0x49   : > { %v638_v25 = vrot.slane %v313_v21, 10  ;;  %v331_v26 = vstv %s642_s30  ;;  %s651_s10 = sld [smem:[#allocation3 + $0x83]]  ;;  %v296_v31 = vadd.f32 %v633_v20, %v288_v19 }
  0x4a   : > { %v310_v28 = vadd.f32 %v636_v23, %v302_v16  ;;  %v640_v29 = vrot.slane %v321_v24, 11  ;;  %v334_v30 = vstv %s643_s5  ;;  %s653_s11 = sld [smem:[#allocation3 + $0x103]]  ;;  %v332_v32 = vmul.f32 %v331_v26, %v914_v1  ;;  %v448_v23 = vld [vmem:[#allocation2] sm:$0xff] }
  0x4b   : > { %v335_v33 = vmul.f32 %v334_v30, %v914_v1  ;;  %v342_v34 = vstv %s645_s6  ;;  %s655_s12 = sld [smem:[#allocation3 + $0x183]]  ;;  %v299_v47 = vadd.f32 %v298_v35, %v296_v31 }
  0x4c   : > { %v318_v36 = vadd.f32 %v638_v25, %v310_v28  ;;  %v343_v37 = vmul.f32 %v342_v34, %v914_v1  ;;  %v350_v38 = vstv %s647_s7  ;;  %s657_s13 = sld [smem:[#allocation6 + $0x3]] }
  0x4d   : > { %v644_v40 = vrot.slane %v335_v33, 9  ;;  %v351_v41 = vmul.f32 %v350_v38, %v914_v1  ;;  %v358_v58 = vstv %s925_s8  ;;  %v394_v63 = vrot.slane %v299_v47, %v393_v42 }
  0x4e   : > { %v326_v43 = vadd.f32 %v640_v29, %v318_v36  ;;  %v646_v44 = vrot.slane %v343_v37, 10  ;;  %v361_v45 = vstv %s928_s9  ;;  %v398_v0 = vrot.slane %v299_v47, %v397_v46 }
  0x4f   : > { %v340_v48 = vadd.f32 %v644_v40, %v332_v32  ;;  %v648_v49 = vrot.slane %v351_v41, 11  ;;  %v364_v50 = vstv %s651_s10  ;;  %v362_v52 = vmul.f32 %v361_v45, %v914_v1 }
  0x50   : > { %v329_v51 = vadd.f32 %v328_v39, %v326_v43  ;;  %v365_v53 = vmul.f32 %v364_v50, %v914_v1  ;;  %v372_v54 = vstv %s653_s11 }
  0x51   : > { %v348_v55 = vadd.f32 %v646_v44, %v340_v48  ;;  %v373_v56 = vmul.f32 %v372_v54, %v914_v1  ;;  %v380_v57 = vstv %s655_s12 }
  0x52   : > { %v652_v59 = vrot.slane %v365_v53, 9  ;;  %v381_v60 = vmul.f32 %v380_v57, %v914_v1  ;;  %v405_v4 = vrot.slane %v329_v51, %v393_v42  ;;  %v409_v5 = vrot.slane %v329_v51, %v397_v46 }
  0x53   : > { %v356_v61 = vadd.f32 %v648_v49, %v348_v55  ;;  %v654_v62 = vrot.slane %v373_v56, 10  ;;  %v388_v8 = vstv %s657_s13 }
  0x54   : > { %v370_v2 = vadd.f32 %v652_v59, %v362_v52  ;;  %v656_v3 = vrot.slane %v381_v60, 11  ;;  %v435_v12 = vsel %vm434_vm0, %v394_v63, %v405_v4  ;;  %v436_v13 = vsel %vm434_vm0, %v398_v0, %v409_v5 }
  0x55   : > { %v359_v6 = vadd.f32 %v358_v58, %v356_v61 }
  0x56   : > { %v378_v7 = vadd.f32 %v654_v62, %v370_v2 }
  0x57   : > { %v416_v9 = vrot.slane %v359_v6, %v393_v42  ;;  %v420_v10 = vrot.slane %v359_v6, %v397_v46 }
  0x58   : > { %v386_v11 = vadd.f32 %v656_v3, %v378_v7 }
  0x59   : > { %v438_v14 = vsel %vm437_vm1, %v435_v12, %v416_v9  ;;  %v439_v15 = vsel %vm437_vm1, %v436_v13, %v420_v10 }
  0x5a   : > { %v389_v1 = vadd.f32 %v388_v8, %v386_v11 }
  0x5c   : > { %v427_v16 = vrot.slane %v389_v1, %v393_v42  ;;  %v431_v17 = vrot.slane %v389_v1, %v397_v46 }
  0x5e   : > { %v441_v18 = vsel %vm440_vm2, %v438_v14, %v427_v16  ;;  %v442_v19 = vsel %vm440_vm2, %v439_v15, %v431_v17 }
  0x5f   : > { %v445_v20 = vcombine.low %v441_v18, %v442_v19  ;;  %v449_v21 = vmul.f32 %v441_v18, %v441_v18  ;;  %v450_v22 = vmul.f32 %v442_v19, %v442_v19 }
  0x61   : > { %447 = vst [vmem:[%s909_s14] sm:$0xff] %v445_v20  ;;  %v453_v24 = vcombine.low %v449_v21, %v450_v22  ;;  %460 = sbr.rel (%p658_p6) target bundleno = 316 (0x13c), region = 48 }
  0x63   : > { %v455_v25 = vadd.f32 %v453_v24, %v448_v23 }
  0x65   : > { %456 = vst [vmem:[#allocation2] sm:$0xff] %v455_v25 }
  0x66   : > { %vm465_vm3 = vcmask 1043456   ;;  %vm479_vm4 = vcmask 0  }
  0x6c   : > { %v461_v26 = vld [vmem:[#allocation2] sm:$0xff] }
  0x6d   : > { %v463_v27 = vcombine.high %v461_v26, %v461_v26  ;;  %v466_v28 = vsel %vm465_vm3, %v461_v26, 0.0 }
  0x6f   : > { %v467_v29 = vsel %vm465_vm3, %v463_v27, 0.0 }
  0x70   : > { %v468_v30 = vadd.f32 %v467_v29, %v466_v28 }
  0x72   : > { %469 = vadd.xlane.f32.xlu0 %v468_v30 }
  0xfb   : > { %v470_v31 = vpop.xlane.xlu0 %469 }
  0xfc   : > { %v471_v32 = vrot.slane %v470_v31, 4 }
  0xfe   : > { %v472_v33 = vadd.f32 %v471_v32, %v470_v31 }
 0x100   : > { %v473_v34 = vrot.slane %v472_v33, 2 }
 0x102   : > { %v474_v35 = vadd.f32 %v473_v34, %v472_v33 }
 0x104   : > { %v475_v36 = vrot.slane %v474_v35, 1 }
 0x106   : > { %v476_v37 = vadd.f32 %v475_v36, %v474_v35 }
 0x108   : > { %665 = vpush %v476_v37 }
 0x139   : > { %s666_s14 = spop %665 }
 0x13a   : > { %v478_v38 = vstv %s666_s14 }
 0x13b   : > { %480 = vst.msk [vmem:[#allocation8] sm:$0x1] %vm479_vm4, %v478_v38 }
 0x13c PF: > { %p946_p8 = scmp.eq.s32.totalorder %s614_s18, 1  ;;  %s814_s20 = smov [#allocation8]  }
 0x13d   : > { %s501_s21 = sshll.u32 %s814_s20, 4  ;;  %s502_s21 = int_to_ptr.vmem [resolvable:$true] %s501_s21 }
 0x13e   : > { %s751_s22 = scalar_lea.vmem %s502_s21, 16  ;;  %s757_s23 = scalar_lea.vmem %s502_s21, 32 }
 0x13f   : > { %p752_p12 = scmp.ne.s32.totalorder %s502_s21, %s751_s22  ;;  %p758_p1 = scmp.lt.s32.totalorder %s502_s21, %s502_s21 }
 0x140   : > { %p759_p2 = scmp.lt.s32.totalorder %s757_s23, %s751_s22 }
 0x141   : > { %p753_p13 = pnand %p752_p12, %p946_p8 }
 0x142   : > { %p760_p5 = por %p759_p2, %p758_p1 }
 0x143   : > { %p754_p0 = pneg %p753_p13 }
 0x145   : > { %p761_p7 = pnand %p760_p5, %p754_p0 }
 0x147   : > { %764 = shalt.err (!%p761_p7)
}
 0x148   : > { %676 = dma.vmem_to_hbm [thread:$0]  (%p946_p8), %s502_s21, 16, %s974_s4, [#allocation4]  }
 0x149   : > { %796 = dma.done.wait (%p946_p8), [#allocation4], 16  }
 0x14a   : > { %798 = vsyncadd (%p946_p8), [#allocation4], 4294967280 }
 0x14b PF: > { %s18_s17 = sadd.s32 1, %s809_s17   ;;  %s984_s15 = smov %s805_s16 }
 0x14c   : > { %p15_p9 = scmp.ge.s32.totalorder %s18_s17, 4   ;;  %s985_s16 = smov %s987_s19 }
 0x14e   :  { %17 = sbr.rel (!%p15_p9) target bundleno = 4 (0x4), region = 88 }
 0x153   :  { %526 = vsyncpa [#allocation4], 1 }
 0x154   :  { %528 = vsyncpa [#allocation4 + $0x1], 1 }
 0x155   :  { %529 = vsyncpa [#allocation5], 1 }
 0x156   :  { %531 = vsyncpa [#allocation5 + $0x1], 1 }
 0x157   :  { %532 = vsyncpa [#allocation7], 1 }

</bundles_post_ra>
